<compile_context>
chip_gen: v5e
topology: v5e:2x2
jax: 0.10.0
libtpu: 0.0.40
codegen_flags: <defaults>
</compile_context>

<pallas_src>
import functools

import jax
import jax.numpy as jnp
from jax.experimental import pallas as pl
from jax.experimental.pallas import tpu as pltpu

IN_FEATURES = 784
N_CLASSES = 10
C_PAD = 128          # classes padded to one full lane width (unmasked stores)
_NEG_BIG = -1e30     # padded-class bias; exp() underflows to exactly 0 in f32


def mlp_kernel(x_ref,
               w1_ref, b1_ref,
               w2_ref, b2_ref,
               w3_ref, b3_ref,
               w4_ref, b4_ref,
               out_ref):
    """Fused forward pass for one (tb, 784) batch tile.

    Layer 1 runs in the streaming dtype (bf16 or f32) on the MXU with f32
    accumulation; layers 2-4 are tiny (64/32/16 wide) and stay in f32 — they
    are hidden under the x DMA on every generation, so narrowing them buys
    nothing.  Final matmul lands in a lane-dense (tb, 128) logits slab, then a
    numerically-stable log_softmax along the class axis.  Lanes 10..127 carry
    a -1e30 bias so their exp() is exactly 0 and the log_softmax over the 10
    real classes is unaffected.
    """
    x = x_ref[...]

    h = jnp.dot(x, w1_ref[...], preferred_element_type=jnp.float32) + b1_ref[...]
    h = jnp.maximum(h, 0.0)

    h = jnp.dot(h, w2_ref[...], preferred_element_type=jnp.float32) + b2_ref[...]
    h = jnp.maximum(h, 0.0)

    h = jnp.dot(h, w3_ref[...], preferred_element_type=jnp.float32) + b3_ref[...]
    h = jnp.maximum(h, 0.0)

    logits = jnp.dot(h, w4_ref[...], preferred_element_type=jnp.float32) + b4_ref[...]

    m = jnp.max(logits, axis=1, keepdims=True)
    shifted = logits - m
    lse = jnp.log(jnp.sum(jnp.exp(shifted), axis=1, keepdims=True))
    out_ref[...] = shifted - lse


def _cdiv(a, b):
    return (a + b - 1) // b


def _round_up(n, m):
    return ((n + m - 1) // m) * m


def _choose_batch_tile(batch, max_block_batch):
    """Pick the batch tile.

    Aim for >= 4 grid steps when the batch is large enough (pipelines the x
    DMA under compute and lets v7x shard the parallel axis over both
    TensorCores), but never shrink below 512 rows (measured ~85% of HBM
    roofline; smaller tiles pay per-step overhead) and never exceed the
    (8-rounded) batch.  Tile is always a sublane multiple of 8.
    """
    target = _round_up(max(_cdiv(batch, 4), 1), 8)
    tb = min(int(max_block_batch), max(512, target))
    tb = _round_up(max(tb, 8), 8)
    return min(tb, _round_up(batch, 8))


@functools.partial(jax.jit, static_argnames=("max_block_batch", "slice_output"))
def digit_classifier_forward(x, params, *, max_block_batch=1024,
                             slice_output=True):
    """x: (batch, 784) in f32 or (recommended) bf16 -> log-probabilities.

    slice_output=True  -> (batch, 10): module semantics (one extra copy op).
    slice_output=False -> (batch, 128) lane-dense slab; real classes are in
                          lanes 0..9 — consumers should fuse the slice.

    max_block_batch is the batch-tile ceiling.  1024 keeps the double-buffered
    x tile comfortably inside every generation's scoped VMEM (incl. v7x's
    64 MiB/TC); ~2048 is the v7x ceiling, larger only makes sense on v5e/v6e
    (with a raised vmem_limit_bytes) and buys ~1% at best.
    """
    (w1, b1), (w2, b2), (w3, b3), (w4, b4) = params
    batch, feat = x.shape
    assert feat == IN_FEATURES, "expected flattened 28x28 MNIST images"

    # x is streamed straight from HBM in its incoming dtype — no wrapper-side
    # pad / copy / cast (those are their own HBM passes).  Only w1 (tiny) is
    # matched to x's dtype so layer 1 uses the bf16-native MXU path when the
    # caller provides bf16 activations.
    w1 = w1.astype(x.dtype)

    # Lane-dense logits: pad W4 columns with zeros; padded bias lanes get a
    # huge negative value so they drop out of the softmax exactly.
    w4p = jnp.zeros((16, C_PAD), jnp.float32).at[:, :N_CLASSES].set(w4)
    b4p = jnp.full((1, C_PAD), _NEG_BIG, jnp.float32).at[:, :N_CLASSES].set(b4)

    tb = _choose_batch_tile(batch, max_block_batch)
    grid = (_cdiv(batch, tb),)   # ragged batch -> masked partial trailing block

    x_bytes = x.size * x.dtype.itemsize
    w_bytes = (w1.size * w1.dtype.itemsize
               + 4 * (b1.size + w2.size + b2.size + w3.size + b3.size
                      + w4p.size + b4p.size))
    cost = pl.CostEstimate(
        flops=2 * batch * (IN_FEATURES * 64 + 64 * 32 + 32 * 16 + 16 * C_PAD),
        transcendentals=batch * (C_PAD + 1),
        bytes_accessed=x_bytes + batch * C_PAD * 4 + w_bytes,
    )

    const = lambda i: (0, 0)   # weights/biases: same block every step -> DMA'd once

    out = pl.pallas_call(
        mlp_kernel,
        out_shape=jax.ShapeDtypeStruct((batch, C_PAD), jnp.float32),
        grid=grid,
        in_specs=[
            pl.BlockSpec((tb, IN_FEATURES), lambda i: (i, 0)),   # x: streamed
            # The eight constant-index specs below could be single-buffered
            # (pipeline_mode=pl.Buffered(1)) to shave ~0.4 MiB of VMEM; left
            # at the default since headroom at tb<=1024 is ample on all gens.
            pl.BlockSpec((IN_FEATURES, 64), const),
            pl.BlockSpec((1, 64), const),
            pl.BlockSpec((64, 32), const),
            pl.BlockSpec((1, 32), const),
            pl.BlockSpec((32, 16), const),
            pl.BlockSpec((1, 16), const),
            pl.BlockSpec((16, C_PAD), const),
            pl.BlockSpec((1, C_PAD), const),
        ],
        out_specs=pl.BlockSpec((tb, C_PAD), lambda i: (i, 0)),
        compiler_params=pltpu.CompilerParams(
            dimension_semantics=("parallel",),   # v7x: shard batch over 2 TCs
            vmem_limit_bytes=32 * 1024 * 1024,
        ),
        cost_estimate=cost,
    )(x, w1, b1, w2, b2, w3, b3, w4p, b4p)

    if slice_output:
        out = out[:, :N_CLASSES]   # module semantics; skip via slice_output=False
    return out


def init_params(key):
    """Deterministic synthetic parameters with the module's shapes.

    Weights stored as (in, out); biases stored as (1, out) so they stay 2-D
    (TPU-friendly) and broadcast over the batch exactly like PyTorch's bias.
    """
    dims = [(784, 64), (64, 32), (32, 16), (16, 10)]
    params = []
    for i, (fan_in, fan_out) in enumerate(dims):
        kw, kb = jax.random.split(jax.random.fold_in(key, i))
        bound = 1.0 / jnp.sqrt(jnp.float32(fan_in))  # PyTorch Linear default range
        w = jax.random.uniform(kw, (fan_in, fan_out), jnp.float32, -bound, bound)
        b = jax.random.uniform(kb, (1, fan_out), jnp.float32, -bound, bound)
        params.append((w, b))
    return params


def reference_forward(x, params):
    """Plain-JAX f32 reference for correctness checks."""
    (w1, b1), (w2, b2), (w3, b3), (w4, b4) = params
    h = jnp.maximum(x @ w1 + b1, 0.0)
    h = jnp.maximum(h @ w2 + b2, 0.0)
    h = jnp.maximum(h @ w3 + b3, 0.0)
    logits = h @ w4 + b4
    return jax.nn.log_softmax(logits, axis=1)


if __name__ == "__main__":
    key = jax.random.PRNGKey(0)
    k_x, k_p = jax.random.split(key)
    params = init_params(k_p)

    # 1) f32 path, single grid step: tight structural check vs the reference.
    x32 = jax.random.normal(k_x, (8, IN_FEATURES), dtype=jnp.float32)
    out32 = jax.block_until_ready(digit_classifier_forward(x32, params))
    ref32 = reference_forward(x32, params)
    assert out32.shape == (8, N_CLASSES)
    assert jnp.allclose(out32, ref32, atol=1e-5, rtol=1e-5), "f32 mismatch"

    # 2) bf16 streaming interface, ragged batch, multi-step grid (3 tiles with
    #    a partial trailing block) and the un-sliced lane-dense output path.
    xbf = jax.random.normal(jax.random.fold_in(k_x, 1), (137, IN_FEATURES),
                            dtype=jnp.float32).astype(jnp.bfloat16)
    slab = jax.block_until_ready(
        digit_classifier_forward(xbf, params, max_block_batch=64,
                                 slice_output=False))
    assert slab.shape == (137, C_PAD)
    outbf = slab[:, :N_CLASSES]                 # consumer-side slice of the slab
    refbf = reference_forward(xbf.astype(jnp.float32), params)
    assert outbf.shape == (137, N_CLASSES)
    assert jnp.allclose(outbf, refbf, atol=5e-2, rtol=5e-2), "bf16 mismatch"

    print("KERNEL_OK")
</pallas_src>

<mosaic_0001>
module attributes {stable_mosaic.version = 11 : i64} {
  func.func @mlp_kernel(%arg0: i32, %arg1: memref<8x784xf32, #tpu.memory_space<vmem>>, %arg2: memref<784x64xf32, #tpu.memory_space<vmem>>, %arg3: memref<1x64xf32, #tpu.memory_space<vmem>>, %arg4: memref<64x32xf32, #tpu.memory_space<vmem>>, %arg5: memref<1x32xf32, #tpu.memory_space<vmem>>, %arg6: memref<32x16xf32, #tpu.memory_space<vmem>>, %arg7: memref<1x16xf32, #tpu.memory_space<vmem>>, %arg8: memref<16x128xf32, #tpu.memory_space<vmem>>, %arg9: memref<1x128xf32, #tpu.memory_space<vmem>>, %arg10: memref<8x128xf32, #tpu.memory_space<vmem>>) attributes {dimension_semantics = [#tpu.dimension_semantics<parallel>], iteration_bounds = array<i64: 1>, scalar_prefetch = 0 : i64, scratch_operands = 0 : i64, tpu.core_type = #tpu.core_type<tc>, window_params = [{transform_indices = @transform_0, window_bounds = array<i64: 8, 784>}, {pipeline_mode = #tpu.pipeline_mode<synchronous>, transform_indices = @transform_1, window_bounds = array<i64: 784, 64>}, {pipeline_mode = #tpu.pipeline_mode<synchronous>, transform_indices = @transform_2, window_bounds = array<i64: 1, 64>}, {pipeline_mode = #tpu.pipeline_mode<synchronous>, transform_indices = @transform_3, window_bounds = array<i64: 64, 32>}, {pipeline_mode = #tpu.pipeline_mode<synchronous>, transform_indices = @transform_4, window_bounds = array<i64: 1, 32>}, {pipeline_mode = #tpu.pipeline_mode<synchronous>, transform_indices = @transform_5, window_bounds = array<i64: 32, 16>}, {pipeline_mode = #tpu.pipeline_mode<synchronous>, transform_indices = @transform_6, window_bounds = array<i64: 1, 16>}, {pipeline_mode = #tpu.pipeline_mode<synchronous>, transform_indices = @transform_7, window_bounds = array<i64: 16, 128>}, {pipeline_mode = #tpu.pipeline_mode<synchronous>, transform_indices = @transform_8, window_bounds = array<i64: 1, 128>}, {transform_indices = @transform_9, window_bounds = array<i64: 8, 128>}]} {
    %c0 = arith.constant 0 : index
    %c0_0 = arith.constant 0 : index
    %0 = vector.load %arg1[%c0, %c0_0] : memref<8x784xf32, #tpu.memory_space<vmem>>, vector<8x784xf32>
    %c0_1 = arith.constant 0 : index
    %c0_2 = arith.constant 0 : index
    %1 = vector.load %arg2[%c0_1, %c0_2] : memref<784x64xf32, #tpu.memory_space<vmem>>, vector<784x64xf32>
    %cst = arith.constant dense<0.000000e+00> : vector<8x64xf32>
    %2 = tpu.matmul %0, %1, %cst {dimension_numbers = #tpu.dot_dimension_numbers<[1], [0], [0], [1], [0, 0, 1, 1], [], []>} : vector<8x784xf32>, vector<784x64xf32>, vector<8x64xf32> -> vector<8x64xf32>
    %c0_3 = arith.constant 0 : index
    %c0_4 = arith.constant 0 : index
    %3 = vector.load %arg3[%c0_3, %c0_4] : memref<1x64xf32, #tpu.memory_space<vmem>>, vector<1x64xf32>
    %4 = vector.broadcast %3 : vector<1x64xf32> to vector<8x64xf32>
    %5 = arith.addf %2, %4 : vector<8x64xf32>
    %cst_5 = arith.constant 0.000000e+00 : f32
    %6 = vector.broadcast %cst_5 : f32 to vector<8x64xf32>
    %7 = arith.maximumf %5, %6 : vector<8x64xf32>
    %c0_6 = arith.constant 0 : index
    %c0_7 = arith.constant 0 : index
    %8 = vector.load %arg4[%c0_6, %c0_7] : memref<64x32xf32, #tpu.memory_space<vmem>>, vector<64x32xf32>
    %cst_8 = arith.constant dense<0.000000e+00> : vector<8x32xf32>
    %9 = tpu.matmul %7, %8, %cst_8 {dimension_numbers = #tpu.dot_dimension_numbers<[1], [0], [0], [1], [0, 0, 1, 1], [], []>} : vector<8x64xf32>, vector<64x32xf32>, vector<8x32xf32> -> vector<8x32xf32>
    %c0_9 = arith.constant 0 : index
    %c0_10 = arith.constant 0 : index
    %10 = vector.load %arg5[%c0_9, %c0_10] : memref<1x32xf32, #tpu.memory_space<vmem>>, vector<1x32xf32>
    %11 = vector.broadcast %10 : vector<1x32xf32> to vector<8x32xf32>
    %12 = arith.addf %9, %11 : vector<8x32xf32>
    %cst_11 = arith.constant 0.000000e+00 : f32
    %13 = vector.broadcast %cst_11 : f32 to vector<8x32xf32>
    %14 = arith.maximumf %12, %13 : vector<8x32xf32>
    %c0_12 = arith.constant 0 : index
    %c0_13 = arith.constant 0 : index
    %15 = vector.load %arg6[%c0_12, %c0_13] : memref<32x16xf32, #tpu.memory_space<vmem>>, vector<32x16xf32>
    %cst_14 = arith.constant dense<0.000000e+00> : vector<8x16xf32>
    %16 = tpu.matmul %14, %15, %cst_14 {dimension_numbers = #tpu.dot_dimension_numbers<[1], [0], [0], [1], [0, 0, 1, 1], [], []>} : vector<8x32xf32>, vector<32x16xf32>, vector<8x16xf32> -> vector<8x16xf32>
    %c0_15 = arith.constant 0 : index
    %c0_16 = arith.constant 0 : index
    %17 = vector.load %arg7[%c0_15, %c0_16] : memref<1x16xf32, #tpu.memory_space<vmem>>, vector<1x16xf32>
    %18 = vector.broadcast %17 : vector<1x16xf32> to vector<8x16xf32>
    %19 = arith.addf %16, %18 : vector<8x16xf32>
    %cst_17 = arith.constant 0.000000e+00 : f32
    %20 = vector.broadcast %cst_17 : f32 to vector<8x16xf32>
    %21 = arith.maximumf %19, %20 : vector<8x16xf32>
    %c0_18 = arith.constant 0 : index
    %c0_19 = arith.constant 0 : index
    %22 = vector.load %arg8[%c0_18, %c0_19] : memref<16x128xf32, #tpu.memory_space<vmem>>, vector<16x128xf32>
    %cst_20 = arith.constant dense<0.000000e+00> : vector<8x128xf32>
    %23 = tpu.matmul %21, %22, %cst_20 {dimension_numbers = #tpu.dot_dimension_numbers<[1], [0], [0], [1], [0, 0, 1, 1], [], []>} : vector<8x16xf32>, vector<16x128xf32>, vector<8x128xf32> -> vector<8x128xf32>
    %c0_21 = arith.constant 0 : index
    %c0_22 = arith.constant 0 : index
    %24 = vector.load %arg9[%c0_21, %c0_22] : memref<1x128xf32, #tpu.memory_space<vmem>>, vector<1x128xf32>
    %25 = vector.broadcast %24 : vector<1x128xf32> to vector<8x128xf32>
    %26 = arith.addf %23, %25 : vector<8x128xf32>
    %cst_23 = arith.constant dense<0xFF800000> : vector<8xf32>
    %27 = vector.multi_reduction <maximumf>, %26, %cst_23 [1] : vector<8x128xf32> to vector<8xf32>
    %28 = vector.shape_cast %27 : vector<8xf32> to vector<8x1xf32>
    %29 = vector.broadcast %28 : vector<8x1xf32> to vector<8x128xf32>
    %30 = arith.subf %26, %29 : vector<8x128xf32>
    %31 = math.exp %30 : vector<8x128xf32>
    %cst_24 = arith.constant dense<0.000000e+00> : vector<8xf32>
    %32 = vector.multi_reduction <add>, %31, %cst_24 [1] : vector<8x128xf32> to vector<8xf32>
    %33 = vector.shape_cast %32 : vector<8xf32> to vector<8x1xf32>
    %34 = math.log %33 : vector<8x1xf32>
    %35 = vector.broadcast %34 : vector<8x1xf32> to vector<8x128xf32>
    %36 = arith.subf %30, %35 : vector<8x128xf32>
    %c0_25 = arith.constant 0 : index
    %c0_26 = arith.constant 0 : index
    %37 = vector.load %arg10[%c0_25, %c0_26] : memref<8x128xf32, #tpu.memory_space<vmem>>, vector<8x128xf32>
    tpu.vector_store %arg10[%c0_25, %c0_26], %36 {strides = array<i32>} : memref<8x128xf32, #tpu.memory_space<vmem>>, vector<8x128xf32>,
    return
  }
  func.func @transform_0(%arg0: i32) -> (i32, i32) {
    %c0_i32 = arith.constant 0 : i32
    %c0_i32_0 = arith.constant 0 : i32
    return %arg0, %c0_i32 : i32, i32
  }
  func.func @transform_1(%arg0: i32) -> (i32, i32) {
    %c0_i32 = arith.constant 0 : i32
    %c0_i32_0 = arith.constant 0 : i32
    %c0_i32_1 = arith.constant 0 : i32
    return %c0_i32, %c0_i32_0 : i32, i32
  }
  func.func @transform_2(%arg0: i32) -> (i32, i32) {
    %c0_i32 = arith.constant 0 : i32
    %c0_i32_0 = arith.constant 0 : i32
    %c0_i32_1 = arith.constant 0 : i32
    return %c0_i32, %c0_i32_0 : i32, i32
  }
  func.func @transform_3(%arg0: i32) -> (i32, i32) {
    %c0_i32 = arith.constant 0 : i32
    %c0_i32_0 = arith.constant 0 : i32
    %c0_i32_1 = arith.constant 0 : i32
    return %c0_i32, %c0_i32_0 : i32, i32
  }
  func.func @transform_4(%arg0: i32) -> (i32, i32) {
    %c0_i32 = arith.constant 0 : i32
    %c0_i32_0 = arith.constant 0 : i32
    %c0_i32_1 = arith.constant 0 : i32
    return %c0_i32, %c0_i32_0 : i32, i32
  }
  func.func @transform_5(%arg0: i32) -> (i32, i32) {
    %c0_i32 = arith.constant 0 : i32
    %c0_i32_0 = arith.constant 0 : i32
    %c0_i32_1 = arith.constant 0 : i32
    return %c0_i32, %c0_i32_0 : i32, i32
  }
  func.func @transform_6(%arg0: i32) -> (i32, i32) {
    %c0_i32 = arith.constant 0 : i32
    %c0_i32_0 = arith.constant 0 : i32
    %c0_i32_1 = arith.constant 0 : i32
    return %c0_i32, %c0_i32_0 : i32, i32
  }
  func.func @transform_7(%arg0: i32) -> (i32, i32) {
    %c0_i32 = arith.constant 0 : i32
    %c0_i32_0 = arith.constant 0 : i32
    %c0_i32_1 = arith.constant 0 : i32
    return %c0_i32, %c0_i32_0 : i32, i32
  }
  func.func @transform_8(%arg0: i32) -> (i32, i32) {
    %c0_i32 = arith.constant 0 : i32
    %c0_i32_0 = arith.constant 0 : i32
    %c0_i32_1 = arith.constant 0 : i32
    return %c0_i32, %c0_i32_0 : i32, i32
  }
  func.func @transform_9(%arg0: i32) -> (i32, i32) {
    %c0_i32 = arith.constant 0 : i32
    %c0_i32_0 = arith.constant 0 : i32
    return %arg0, %c0_i32 : i32, i32
  }
}

</mosaic_0001>

<bundles_post_ra>
// kernel: digit_classifier_forward.1
= control target key start
LH: loop header
LB: loop body
LE: loop exit
PB: predicated region body
PF: predicated region fallthrough
CT: control target
= control target key end

     0   :  { %s877_s0 = inlined_call_operand.vmem [shape: f32[8,784], index: 0, kind: input, shape index: {}]   ;;  %s878_s1 = inlined_call_operand.vmem [shape: f32[784,64], index: 1, kind: input, shape index: {}]   ;;  %s879_s2 = inlined_call_operand.vmem [shape: f32[1,64], index: 2, kind: input, shape index: {}]   ;;  %s880_s3 = inlined_call_operand.vmem [shape: f32[64,32], index: 3, kind: input, shape index: {}]   ;;  %s881_s4 = inlined_call_operand.vmem [shape: f32[1,32], index: 4, kind: input, shape index: {}]   ;;  %s882_s5 = inlined_call_operand.vmem [shape: f32[32,16], index: 5, kind: input, shape index: {}]   ;;  %s883_s6 = inlined_call_operand.vmem [shape: f32[1,16], index: 6, kind: input, shape index: {}]   ;;  %s884_s7 = inlined_call_operand.vmem [shape: f32[16,128], index: 7, kind: input, shape index: {}]   ;;  %s885_s8 = inlined_call_operand.vmem [shape: f32[1,128], index: 8, kind: input, shape index: {}]   ;;  %s886_s9 = inlined_call_operand.hbm [shape: f32[8,128], index: 9, kind: output, shape index: {}]  }
   0x1   :  { %v55_v0 = vld [vmem:[%s878_s1 + $0x78] sm:$0xff]  ;;  %v54_v1 = vld [vmem:[%s878_s1 + $0x70] sm:$0xff]  ;;  %v53_v4 = vld [vmem:[%s878_s1 + $0x68] sm:$0xff] }
   0x2   :  { %v71_v2 = vld [vmem:[%s878_s1 + $0xf8] sm:$0xff]  ;;  %146 = vmatpush.msra.mxu0 %v55_v0  ;;  %v70_v3 = vld [vmem:[%s878_s1 + $0xf0] sm:$0xff]  ;;  %v69_v5 = vld [vmem:[%s878_s1 + $0xe8] sm:$0xff] }
   0x3   :  { %166 = vmatpush.msra.mxu1 %v71_v2  ;;  %v52_v6 = vld [vmem:[%s878_s1 + $0x60] sm:$0xff]  ;;  %v51_v8 = vld [vmem:[%s878_s1 + $0x58] sm:$0xff]  ;;  %v50_v10 = vld [vmem:[%s878_s1 + $0x50] sm:$0xff] }
   0x4   :  { %147 = vmatpush.msra.mxu0 %v54_v1  ;;  %v68_v7 = vld [vmem:[%s878_s1 + $0xe0] sm:$0xff]  ;;  %v67_v9 = vld [vmem:[%s878_s1 + $0xd8] sm:$0xff]  ;;  %v66_v12 = vld [vmem:[%s878_s1 + $0xd0] sm:$0xff] }
   0x5   :  { %167 = vmatpush.msra.mxu1 %v70_v3  ;;  %v87_v11 = vld [vmem:[%s878_s1 + $0x178] sm:$0xff]  ;;  %v86_v13 = vld [vmem:[%s878_s1 + $0x170] sm:$0xff]  ;;  %v85_v15 = vld [vmem:[%s878_s1 + $0x168] sm:$0xff] }
   0x6   :  { %148 = vmatpush.msra.mxu0 %v53_v4  ;;  %186 = vmatpush.msra.mxu2 %v87_v11  ;;  %v103_v14 = vld [vmem:[%s878_s1 + $0x1f8] sm:$0xff]  ;;  %v102_v16 = vld [vmem:[%s878_s1 + $0x1f0] sm:$0xff]  ;;  %v49_v17 = vld [vmem:[%s878_s1 + $0x48] sm:$0xff] }
   0x7   :  { %168 = vmatpush.msra.mxu1 %v69_v5  ;;  %v65_v18 = vld [vmem:[%s878_s1 + $0xc8] sm:$0xff]  ;;  %206 = vmatpush.msra.mxu3 %v103_v14  ;;  %v84_v19 = vld [vmem:[%s878_s1 + $0x160] sm:$0xff]  ;;  %v83_v23 = vld [vmem:[%s878_s1 + $0x158] sm:$0xff] }
   0x8   :  { %149 = vmatpush.msra.mxu0 %v52_v6  ;;  %187 = vmatpush.msra.mxu2 %v86_v13  ;;  %v101_v20 = vld [vmem:[%s878_s1 + $0x1e8] sm:$0xff]  ;;  %v48_v21 = vld [vmem:[%s878_s1 + $0x40] sm:$0xff]  ;;  %v47_v25 = vld [vmem:[%s878_s1 + $0x38] sm:$0xff] }
   0x9   :  { %169 = vmatpush.msra.mxu1 %v68_v7  ;;  %v64_v22 = vld [vmem:[%s878_s1 + $0xc0] sm:$0xff]  ;;  %207 = vmatpush.msra.mxu3 %v102_v16  ;;  %v63_v26 = vld [vmem:[%s878_s1 + $0xb8] sm:$0xff]  ;;  %v82_v27 = vld [vmem:[%s878_s1 + $0x150] sm:$0xff] }
   0xa   :  { %150 = vmatpush.msra.mxu0 %v51_v8  ;;  %188 = vmatpush.msra.mxu2 %v85_v15  ;;  %v100_v24 = vld [vmem:[%s878_s1 + $0x1e0] sm:$0xff]  ;;  %v99_v28 = vld [vmem:[%s878_s1 + $0x1d8] sm:$0xff]  ;;  %v46_v29 = vld [vmem:[%s878_s1 + $0x30] sm:$0xff] }
   0xb   :  { %170 = vmatpush.msra.mxu1 %v67_v9  ;;  %208 = vmatpush.msra.mxu3 %v101_v20  ;;  %v62_v30 = vld [vmem:[%s878_s1 + $0xb0] sm:$0xff]  ;;  %v81_v31 = vld [vmem:[%s878_s1 + $0x148] sm:$0xff]  ;;  %v80_v35 = vld [vmem:[%s878_s1 + $0x140] sm:$0xff] }
   0xc   :  { %151 = vmatpush.msra.mxu0 %v50_v10  ;;  %189 = vmatpush.msra.mxu2 %v84_v19  ;;  %v98_v32 = vld [vmem:[%s878_s1 + $0x1d0] sm:$0xff]  ;;  %v45_v33 = vld [vmem:[%s878_s1 + $0x28] sm:$0xff]  ;;  %v44_v37 = vld [vmem:[%s878_s1 + $0x20] sm:$0xff] }
   0xd   :  { %171 = vmatpush.msra.mxu1 %v66_v12  ;;  %209 = vmatpush.msra.mxu3 %v100_v24  ;;  %v61_v34 = vld [vmem:[%s878_s1 + $0xa8] sm:$0xff]  ;;  %v60_v38 = vld [vmem:[%s878_s1 + $0xa0] sm:$0xff]  ;;  %v79_v39 = vld [vmem:[%s878_s1 + $0x138] sm:$0xff] }
   0xe   :  { %152 = vmatpush.msra.mxu0 %v49_v17  ;;  %190 = vmatpush.msra.mxu2 %v83_v23  ;;  %v97_v36 = vld [vmem:[%s878_s1 + $0x1c8] sm:$0xff]  ;;  %v96_v40 = vld [vmem:[%s878_s1 + $0x1c0] sm:$0xff]  ;;  %v43_v41 = vld [vmem:[%s878_s1 + $0x18] sm:$0xff] }
   0xf   :  { %172 = vmatpush.msra.mxu1 %v65_v18  ;;  %210 = vmatpush.msra.mxu3 %v99_v28  ;;  %v59_v42 = vld [vmem:[%s878_s1 + $0x98] sm:$0xff]  ;;  %v78_v43 = vld [vmem:[%s878_s1 + $0x130] sm:$0xff]  ;;  %v77_v47 = vld [vmem:[%s878_s1 + $0x128] sm:$0xff] }
  0x10   :  { %153 = vmatpush.msra.mxu0 %v48_v21  ;;  %191 = vmatpush.msra.mxu2 %v82_v27  ;;  %v95_v44 = vld [vmem:[%s878_s1 + $0x1b8] sm:$0xff]  ;;  %v42_v45 = vld [vmem:[%s878_s1 + $0x10] sm:$0xff]  ;;  %v41_v49 = vld [vmem:[%s878_s1 + $0x8] sm:$0xff] }
  0x11   :  { %173 = vmatpush.msra.mxu1 %v64_v22  ;;  %211 = vmatpush.msra.mxu3 %v98_v32  ;;  %v58_v46 = vld [vmem:[%s878_s1 + $0x90] sm:$0xff]  ;;  %v57_v50 = vld [vmem:[%s878_s1 + $0x88] sm:$0xff]  ;;  %v76_v51 = vld [vmem:[%s878_s1 + $0x120] sm:$0xff] }
  0x12   :  { %154 = vmatpush.msra.mxu0 %v47_v25  ;;  %192 = vmatpush.msra.mxu2 %v81_v31  ;;  %v94_v48 = vld [vmem:[%s878_s1 + $0x1b0] sm:$0xff]  ;;  %v93_v52 = vld [vmem:[%s878_s1 + $0x1a8] sm:$0xff]  ;;  %v40_v53 = vld [vmem:[%s878_s1] sm:$0xff] }
  0x13   :  { %174 = vmatpush.msra.mxu1 %v63_v26  ;;  %212 = vmatpush.msra.mxu3 %v97_v36  ;;  %v56_v54 = vld [vmem:[%s878_s1 + $0x80] sm:$0xff]  ;;  %v119_v55 = vld [vmem:[%s878_s1 + $0x278] sm:$0xff]  ;;  %v118_v59 = vld [vmem:[%s878_s1 + $0x270] sm:$0xff] }
  0x14   :  { %155 = vmatpush.msra.mxu0 %v46_v29  ;;  %193 = vmatpush.msra.mxu2 %v80_v35  ;;  %v135_v56 = vld [vmem:[%s878_s1 + $0x2f8] sm:$0xff]  ;;  %v92_v58 = vld [vmem:[%s878_s1 + $0x1a0] sm:$0xff]  ;;  %v134_v60 = vld [vmem:[%s878_s1 + $0x2f0] sm:$0xff] }
  0x15   :  { %175 = vmatpush.msra.mxu1 %v62_v30  ;;  %213 = vmatpush.msra.mxu3 %v96_v40  ;;  %v75_v57 = vld [vmem:[%s878_s1 + $0x118] sm:$0xff]  ;;  %v117_v61 = vld [vmem:[%s878_s1 + $0x268] sm:$0xff]  ;;  %v74_v62 = vld [vmem:[%s878_s1 + $0x110] sm:$0xff] }
  0x16   :  { %156 = vmatpush.msra.mxu0 %v45_v33  ;;  %194 = vmatpush.msra.mxu2 %v79_v39  ;;  %v91_v63 = vld [vmem:[%s878_s1 + $0x198] sm:$0xff]  ;;  %v116_v0 = vld [vmem:[%s878_s1 + $0x260] sm:$0xff]  ;;  %v133_v1 = vld [vmem:[%s878_s1 + $0x2e8] sm:$0xff] }
  0x17   :  { %176 = vmatpush.msra.mxu1 %v61_v34  ;;  %214 = vmatpush.msra.mxu3 %v95_v44  ;;  %v132_v2 = vld [vmem:[%s878_s1 + $0x2e0] sm:$0xff]  ;;  %v73_v3 = vld [vmem:[%s878_s1 + $0x108] sm:$0xff]  ;;  %v90_v4 = vld [vmem:[%s878_s1 + $0x190] sm:$0xff] }
  0x18   :  { %157 = vmatpush.msra.mxu0 %v44_v37  ;;  %195 = vmatpush.msra.mxu2 %v78_v43  ;;  %v72_v5 = vld [vmem:[%s878_s1 + $0x100] sm:$0xff]  ;;  %v89_v6 = vld [vmem:[%s878_s1 + $0x188] sm:$0xff] }
  0x19   :  { %177 = vmatpush.msra.mxu1 %v60_v38  ;;  %215 = vmatpush.msra.mxu3 %v94_v48 }
  0x1a   :  { %158 = vmatpush.msra.mxu0 %v43_v41  ;;  %196 = vmatpush.msra.mxu2 %v77_v47 }
  0x1b   :  { %178 = vmatpush.msra.mxu1 %v59_v42  ;;  %216 = vmatpush.msra.mxu3 %v93_v52 }
  0x1c   :  { %159 = vmatpush.msra.mxu0 %v42_v45  ;;  %197 = vmatpush.msra.mxu2 %v76_v51 }
  0x1d   :  { %179 = vmatpush.msra.mxu1 %v58_v46  ;;  %217 = vmatpush.msra.mxu3 %v92_v58 }
  0x1e   :  { %160 = vmatpush.msra.mxu0 %v41_v49  ;;  %198 = vmatpush.msra.mxu2 %v75_v57 }
  0x1f   :  { %180 = vmatpush.msra.mxu1 %v57_v50  ;;  %218 = vmatpush.msra.mxu3 %v91_v63 }
  0x20   :  { %161 = vmatpush.msra.mxu0 %v40_v53  ;;  %199 = vmatpush.msra.mxu2 %v74_v62 }
  0x21   :  { %181 = vmatpush.msra.mxu1 %v56_v54 }
  0x22   :  { %226 = vmatpush.msrb.mxu0 %v119_v55 }
  0x23   :  { %246 = vmatpush.msrb.mxu1 %v135_v56 }
  0x24   :  { %227 = vmatpush.msrb.mxu0 %v118_v59 }
  0x25   :  { %247 = vmatpush.msrb.mxu1 %v134_v60 }
  0x26   :  { %228 = vmatpush.msrb.mxu0 %v117_v61 }
  0x27   :  { %248 = vmatpush.msrb.mxu1 %v133_v1 }
  0x28   :  { %14 = vsyncpa [#allocation3], 0  ;;  %v115_v7 = vld [vmem:[%s878_s1 + $0x258] sm:$0xff]  ;;  %200 = vmatpush.msra.mxu2 %v73_v3  ;;  %219 = vmatpush.msra.mxu3 %v90_v4  ;;  %v35_v9 = vld [vmem:[%s877_s0 + $0x10] sm:$0xff]  ;;  %vm142_vm0 = vcmask 130048   ;;  %vm299_vm1 = vcmask 523264  }
  0x29   :  { %v131_v8 = vld [vmem:[%s878_s1 + $0x2d8] sm:$0xff]  ;;  %229 = vmatpush.msrb.mxu0 %v116_v0  ;;  %249 = vmatpush.msrb.mxu1 %v132_v2  ;;  %v88_v10 = vld [vmem:[%s878_s1 + $0x180] sm:$0xff]  ;;  %v114_v11 = vld [vmem:[%s878_s1 + $0x250] sm:$0xff]  ;;  %vm332_vm2 = vcmask 261120   ;;  %s404_s18 = sshll.u32 %s886_s9, 4  ;;  %s405_s18 = int_to_ptr.hbm [resolvable:$true] %s404_s18 }
  0x2a   :  { %v130_v12 = vld [vmem:[%s878_s1 + $0x2d0] sm:$0xff]  ;;  %201 = vmatpush.msra.mxu2 %v72_v5  ;;  %220 = vmatpush.msra.mxu3 %v89_v6  ;;  %v137_v13 = vld [vmem:[%s878_s1 + $0x308] sm:$0xff]  ;;  %v33_v14 = vld [vmem:[%s877_s0] sm:$0xff] }
  0x2b   :  { %230 = vmatpush.msrb.mxu0 %v115_v7  ;;  %250 = vmatpush.msrb.mxu1 %v131_v8  ;;  %v113_v15 = vld [vmem:[%s878_s1 + $0x248] sm:$0xff]  ;;  %v36_v17 = vld [vmem:[%s877_s0 + $0x18] sm:$0xff]  ;;  %v112_v19 = vld [vmem:[%s878_s1 + $0x240] sm:$0xff] }
  0x2c   :  { %v129_v16 = vld [vmem:[%s878_s1 + $0x2c8] sm:$0xff]  ;;  %202 = vmatmul.f32.vlgmr.msra.gmra.mxu2 %v35_v9  ;;  %221 = vmatpush.msra.mxu3 %v88_v10  ;;  %v128_v20 = vld [vmem:[%s878_s1 + $0x2c0] sm:$0xff]  ;;  %v111_v22 = vld [vmem:[%s878_s1 + $0x238] sm:$0xff] }
  0x2d   :  { %231 = vmatpush.msrb.mxu0 %v114_v11  ;;  %251 = vmatpush.msrb.mxu1 %v130_v12  ;;  %v34_v18 = vld [vmem:[%s877_s0 + $0x8] sm:$0xff]  ;;  %v136_v21 = vld [vmem:[%s878_s1 + $0x300] sm:$0xff]  ;;  %v127_v23 = vld [vmem:[%s878_s1 + $0x2b8] sm:$0xff] }
  0x2e   :  { %280 = vmatpush.msrb.mxu2 %v137_v13  ;;  %162 = vmatmul.f32.vlgmr.msra.gmra.mxu0 %v33_v14  ;;  %v39_v24 = vld [vmem:[%s877_s0 + $0x30] sm:$0xff]  ;;  %v109_v27 = vld [vmem:[%s878_s1 + $0x228] sm:$0xff]  ;;  %v108_v29 = vld [vmem:[%s878_s1 + $0x220] sm:$0xff] }
  0x2f   :  { %232 = vmatpush.msrb.mxu0 %v113_v15  ;;  %252 = vmatpush.msrb.mxu1 %v129_v16  ;;  %v110_v25 = vld [vmem:[%s878_s1 + $0x230] sm:$0xff]  ;;  %v125_v28 = vld [vmem:[%s878_s1 + $0x2a8] sm:$0xff]  ;;  %v124_v30 = vld [vmem:[%s878_s1 + $0x2a0] sm:$0xff] }
  0x30   :  { %222 = vmatmul.f32.vlgmr.msra.gmra.mxu3 %v36_v17  ;;  %182 = vmatmul.f32.vlgmr.msra.gmra.mxu1 %v34_v18  ;;  %v126_v26 = vld [vmem:[%s878_s1 + $0x2b0] sm:$0xff]  ;;  %v107_v31 = vld [vmem:[%s878_s1 + $0x218] sm:$0xff]  ;;  %v105_v35 = vld [vmem:[%s878_s1 + $0x208] sm:$0xff] }
  0x31   :  { %233 = vmatpush.msrb.mxu0 %v112_v19  ;;  %253 = vmatpush.msrb.mxu1 %v128_v20  ;;  %v123_v32 = vld [vmem:[%s878_s1 + $0x298] sm:$0xff]  ;;  %v106_v33 = vld [vmem:[%s878_s1 + $0x210] sm:$0xff]  ;;  %v121_v36 = vld [vmem:[%s878_s1 + $0x288] sm:$0xff] }
  0x32   :  { %281 = vmatpush.msrb.mxu2 %v136_v21  ;;  %v122_v34 = vld [vmem:[%s878_s1 + $0x290] sm:$0xff]  ;;  %v104_v37 = vld [vmem:[%s878_s1 + $0x200] sm:$0xff]  ;;  %v38_v40 = vld [vmem:[%s877_s0 + $0x28] sm:$0xff] }
  0x33   :  { %234 = vmatpush.msrb.mxu0 %v111_v22  ;;  %254 = vmatpush.msrb.mxu1 %v127_v23  ;;  %v120_v38 = vld [vmem:[%s878_s1 + $0x280] sm:$0xff]  ;;  %v294_v41 = vld [vmem:[%s880_s3 + $0x38] sm:$0xff]  ;;  %v293_v42 = vld [vmem:[%s880_s3 + $0x30] sm:$0xff] }
  0x34   :  { %413 = vmatmul.msk.f32.vlgmr.msrb.gmra.mxu2 %vm142_vm0, %v39_v24  ;;  %v37_v39 = vld [vmem:[%s877_s0 + $0x20] sm:$0xff]  ;;  %311 = vmatpush.msrb.mxu3 %v294_v41  ;;  %v292_v43 = vld [vmem:[%s880_s3 + $0x28] sm:$0xff]  ;;  %v290_v45 = vld [vmem:[%s880_s3 + $0x18] sm:$0xff] }
  0x35   :  { %235 = vmatpush.msrb.mxu0 %v110_v25  ;;  %255 = vmatpush.msrb.mxu1 %v126_v26  ;;  %v291_v44 = vld [vmem:[%s880_s3 + $0x20] sm:$0xff]  ;;  %v289_v46 = vld [vmem:[%s880_s3 + $0x10] sm:$0xff]  ;;  %v288_v47 = vld [vmem:[%s880_s3 + $0x8] sm:$0xff] }
  0x36   :  { %312 = vmatpush.msrb.mxu3 %v293_v42  ;;  %v287_v48 = vld [vmem:[%s880_s3] sm:$0xff]  ;;  %v327_v49 = vld [vmem:[%s882_s5 + $0x18] sm:$0xff]  ;;  %v326_v50 = vld [vmem:[%s882_s5 + $0x10] sm:$0xff] }
  0x37   :  { %236 = vmatpush.msrb.mxu0 %v109_v27  ;;  %256 = vmatpush.msrb.mxu1 %v125_v28  ;;  %v418_v51 = vld [vmem:[%s879_s2] ss:$0 sm:$0xff]  ;;  %v325_v3 = vld [vmem:[%s882_s5 + $0x8] sm:$0xff] }
  0x38   :  { %313 = vmatpush.msrb.mxu3 %v292_v43  ;;  %348 = vmatpush.msra.mxu2 %v327_v49  ;;  %v324_v4 = vld [vmem:[%s882_s5] sm:$0xff]  ;;  %v358_v5 = vld [vmem:[%s884_s7 + $0x8] sm:$0xff] }
  0x39   :  { %237 = vmatpush.msrb.mxu0 %v108_v29  ;;  %257 = vmatpush.msrb.mxu1 %v124_v30  ;;  %v419_v6 = vld [vmem:[%s881_s4] ss:$0 sm:$0xff] }
  0x3a   :  { %314 = vmatpush.msrb.mxu3 %v291_v44  ;;  %349 = vmatpush.msra.mxu2 %v326_v50  ;;  %v357_v10 = vld [vmem:[%s884_s7] sm:$0xff] }
  0x3b   :  { %238 = vmatpush.msrb.mxu0 %v107_v31  ;;  %258 = vmatpush.msrb.mxu1 %v123_v32  ;;  %v420_v11 = vld [vmem:[%s883_s6] ss:$0 sm:$0xff]  ;;  %s452_s6 = smov [#allocation2]  }
  0x3c   :  { %315 = vmatpush.msrb.mxu3 %v290_v45  ;;  %350 = vmatpush.msra.mxu2 %v325_v3  ;;  %v421_v15 = vld [vmem:[%s885_s8] ss:$0 sm:$0xff]  ;;  %s402_s7 = sshll.u32 %s452_s6, 4  ;;  %s403_s7 = int_to_ptr.vmem [resolvable:$true] %s402_s7 }
  0x3d   :  { %239 = vmatpush.msrb.mxu0 %v106_v33  ;;  %259 = vmatpush.msrb.mxu1 %v122_v34 }
  0x3e   :  { %316 = vmatpush.msrb.mxu3 %v289_v46  ;;  %351 = vmatpush.msra.mxu2 %v324_v4 }
  0x3f   :  { %240 = vmatpush.msrb.mxu0 %v105_v35  ;;  %260 = vmatpush.msrb.mxu1 %v121_v36 }
  0x40   :  { %317 = vmatpush.msrb.mxu3 %v288_v47  ;;  %380 = vmatpush.msrb.mxu2 %v358_v5 }
  0x41   :  { %241 = vmatpush.msrb.mxu0 %v104_v37  ;;  %261 = vmatpush.msrb.mxu1 %v120_v38 }
  0x42   :  { %242 = vmatmul.f32.vlgmr.msrb.gmra.mxu0 %v37_v39  ;;  %262 = vmatmul.f32.vlgmr.msrb.gmra.mxu1 %v38_v40 }
  0x43   :  { %318 = vmatpush.msrb.mxu3 %v287_v48  ;;  %381 = vmatpush.msrb.mxu2 %v357_v10 }
  0xab   :  { %v163_v52 = vpop.f32.mrf.mxu0 }
  0xac   :  { %v164_v53 = vadd.f32 %v418_v51, %v163_v52 }
  0xad   :  { %v183_v54 = vpop.f32.mrf.mxu1 }
  0xae   :  { %v184_v55 = vadd.f32 %v183_v54, %v164_v53 }
  0xaf   :  { %v203_v56 = vpop.f32.mrf.mxu2 }
  0xb0   :  { %v204_v57 = vadd.f32 %v203_v56, %v184_v55 }
  0xb3   :  { %v223_v58 = vpop.f32.mrf.mxu3 }
  0xb4   :  { %v224_v59 = vadd.f32 %v223_v58, %v204_v57 }
  0xb7   :  { %v283_v63 = vpop.f32.mrf.mxu2 }
  0xbf   :  { %v243_v60 = vpop.f32.mrf.mxu0  ;;  %v263_v61 = vpop.f32.mrf.mxu1 }
  0xc0   :  { %v244_v62 = vadd.f32 %v243_v60, %v224_v59 }
  0xc2   :  { %v264_v0 = vadd.f32 %v263_v61, %v244_v62 }
  0xc4   :  { %v284_v1 = vadd.f32 %v283_v63, %v264_v0 }
  0xc6   :  { %v286_v2 = vmax.f32 %v284_v1, 0.0 }
  0xc8   :  { %414 = vmatmul.msk.f32.vlgmr.msrb.gmra.mxu3 %vm299_vm1, %v286_v2 }
 0x14b   :  { %v320_v7 = vpop.f32.mrf.mxu3 }
 0x14c   :  { %v321_v8 = vadd.f32 %v419_v6, %v320_v7 }
 0x14e   :  { %v323_v9 = vmax.f32 %v321_v8, 0.0 }
 0x150   :  { %415 = vmatmul.msk.f32.vlgmr.msra.gmra.mxu2 %vm332_vm2, %v323_v9 }
 0x1d3   :  { %v353_v12 = vpop.f32.mrf.mxu2 }
 0x1d4   :  { %v354_v13 = vadd.f32 %v420_v11, %v353_v12 }
 0x1d6   :  { %v356_v14 = vmax.f32 %v354_v13, 0.0 }
 0x1d8   :  { %416 = vmatmul.msk.f32.vlgmr.msrb.gmra.mxu2 %vm142_vm0, %v356_v14 }
 0x25b   :  { %v383_v16 = vpop.f32.mrf.mxu2 }
 0x25c   :  { %v384_v17 = vadd.f32 %v421_v15, %v383_v16 }
 0x25e   :  { %386 = vmax.xlane.f32.xlu0 %v384_v17 }
 0x2d1   :  { %v387_v18 = vpop.xlane.xlu0 %386 }
 0x2d2   :  { %v388_v19 = vsub.f32 %v384_v17, %v387_v18 }
 0x2d4   :  { %v389_v20 = vmul.f32 1.442695, %v388_v19 }
 0x2d6   :  { %422 = vpow2.f32 %v389_v20 }
 0x2dc   :  { %v423_v21 = vpop.eup %422 }
 0x2dd   :  { %391 = vadd.xlane.f32.xlu0 %v423_v21 }
 0x350   :  { %v392_v22 = vpop.xlane.xlu0 %391 }
 0x351   :  { %424 = vlog2.f32 %v392_v22 }
 0x357   :  { %v425_v23 = vpop.eup %424 }
 0x358   :  { %v394_v24 = vmul.f32 0.6931472, %v425_v23 }
 0x35a   :  { %v395_v25 = vsub.f32 %v388_v19, %v394_v24 }
 0x35c   :  { %396 = vst [vmem:[#allocation2] sm:$0xff] %v395_v25 }
 0x35d   :  { %407 = dma.vmem_to_hbm [thread:$0]  %s403_s7, 128, %s405_s18, [#allocation3]  }
 0x35e   :  { %450 = dma.done.wait [#allocation3], 128  }
 0x35f   :  { %451 = vsyncadd [#allocation3], 4294967168 }
 0x360   :  { %412 = vsyncpa [#allocation3], 1 }

</bundles_post_ra>
